<compile_context>
chip_gen: v7x
topology: tpu7x:2x2x1
jax: 0.10.0
libtpu: 0.0.40
codegen_flags: <defaults>
</compile_context>

<pallas_src>
from functools import partial

import jax
import jax.numpy as jnp
from jax.experimental import pallas as pl
from jax.experimental.pallas import tpu as pltpu


def _round_up(n, m):
    return ((n + m - 1) // m) * m


def _cont_loss_kernel(x_ref, c_ref, cc_ref, labels_ref, l1_ref, l2_ref, *,
                      margin, batch_size, block_b):
    # MXU: x @ centers.T in the input dtype, f32 accumulation.   (tB, C)
    prod = jax.lax.dot_general(
        x_ref[...], c_ref[...], (((1,), (1,)), ((), ())),
        preferred_element_type=jnp.float32)

    x = x_ref[...].astype(jnp.float32)                      # (tB, D)
    xx = jnp.sum(x * x, axis=1, keepdims=True)              # (tB, 1)
    cc = cc_ref[...]                                        # (1, C)  f32

    # Guard: cancellation can make the squared distance slightly negative when
    # a sample sits on its center; clamp before the sqrt (protects both losses).
    d2 = jnp.maximum(xx + cc - 2.0 * prod, 0.0)
    d = jnp.sqrt(d2)                                        # (tB, C)

    tb, num_classes = d.shape
    labels = labels_ref[...]                                # (tB, 1) int32
    classes = jax.lax.broadcasted_iota(jnp.int32, (tb, num_classes), 1)
    own = labels == classes                                 # (tB, C)

    # Rows past the true batch (zero-padding of the last tile) contribute 0.
    row_ids = (pl.program_id(0) * block_b
               + jax.lax.broadcasted_iota(jnp.int32, (tb, 1), 0))
    valid = (row_ids < batch_size).astype(jnp.float32)      # (tB, 1)

    # Fused epilogue over d: both per-row partial sums in one pass.
    l1_row = jnp.sum(jnp.where(own, jnp.clip(d, 1e-12, 1e12), 0.0),
                     axis=1, keepdims=True)                 # (tB, 1)
    l2_row = jnp.sum(jnp.where(own, 0.0,
                               jnp.maximum(jnp.float32(margin) - d, 0.0)),
                     axis=1, keepdims=True)                 # (tB, 1)

    l1_ref[...] = jnp.sum(l1_row * valid, axis=0, keepdims=True).reshape(1, 1, 1)
    l2_ref[...] = jnp.sum(l2_row * valid, axis=0, keepdims=True).reshape(1, 1, 1)


def cont_loss(x, centers, labels, margin, *, block_b=128):
    """x: (B, D), centers: (C, D), labels: (B,) int. Returns (loss_1, loss_2)."""
    B, D = x.shape
    C, _ = centers.shape

    tb = min(_round_up(block_b, 8), _round_up(B, 8))
    nb = pl.cdiv(B, tb)
    b_pad = nb * tb

    x_p = jnp.pad(x, ((0, b_pad - B), (0, 0))) if b_pad != B else x
    labels2d = labels.astype(jnp.int32).reshape(B, 1)
    labels_p = (jnp.pad(labels2d, ((0, b_pad - B), (0, 0)), constant_values=-1)
                if b_pad != B else labels2d)

    # ||c||^2 precomputed once in the wrapper (no per-tile 1-row matmul).
    cc = jnp.sum(centers.astype(jnp.float32) ** 2, axis=1).reshape(1, C)

    kernel = partial(_cont_loss_kernel, margin=float(margin),
                     batch_size=B, block_b=tb)

    l1_part, l2_part = pl.pallas_call(
        kernel,
        out_shape=(jax.ShapeDtypeStruct((nb, 1, 1), jnp.float32),
                   jax.ShapeDtypeStruct((nb, 1, 1), jnp.float32)),
        grid=(nb,),
        in_specs=[
            pl.BlockSpec((tb, D), lambda i: (i, 0)),   # x tile (streamed)
            pl.BlockSpec((C, D), lambda i: (0, 0)),    # centers (resident)
            pl.BlockSpec((1, C), lambda i: (0, 0)),    # ||c||^2 (resident)
            pl.BlockSpec((tb, 1), lambda i: (i, 0)),   # labels tile
        ],
        out_specs=(
            pl.BlockSpec((1, 1, 1), lambda i: (i, 0, 0)),
            pl.BlockSpec((1, 1, 1), lambda i: (i, 0, 0)),
        ),
        compiler_params=pltpu.CompilerParams(
            dimension_semantics=("parallel",)),        # batch tiles across TCs
    )(x_p, centers, cc, labels_p)

    # Tiny final reduction + normalization in plain JAX.
    loss_1 = jnp.sum(l1_part) / jnp.float32(B)
    loss_2 = jnp.sum(l2_part) / jnp.float32(C * B - B)
    return loss_1, loss_2


def cont_loss_ref(x, centers, labels, margin):
    """Pure-JAX reference mirroring the PyTorch forward (with the same >=0 guard)."""
    B = x.shape[0]
    C = centers.shape[0]
    d2 = (jnp.sum(x * x, axis=1, keepdims=True)
          + jnp.sum(centers * centers, axis=1)[None, :]
          - 2.0 * x @ centers.T)
    distmat = jnp.sqrt(jnp.maximum(d2, 0.0))
    mask = labels[:, None] == jnp.arange(C)[None, :]
    loss_1 = jnp.mean(jnp.sum(
        jnp.where(mask, jnp.clip(distmat, 1e-12, 1e12), 0.0), axis=1))
    loss_2 = jnp.sum(jnp.where(mask, 0.0,
                               jnp.maximum(margin - distmat, 0.0))) / (C * B - B)
    return loss_1, loss_2


if __name__ == "__main__":
    key = jax.random.PRNGKey(0)

    # Case 1: module-sized demo (single tile).
    B, C, D = 8, 8, 32
    margin = 0.3
    kx, kc, kl, key = jax.random.split(key, 4)
    x = jax.random.normal(kx, (B, D), dtype=jnp.float32)
    centers = jax.random.normal(kc, (C, D), dtype=jnp.float32)  # ~torch.randn init
    labels = jax.random.randint(kl, (B,), 0, C, dtype=jnp.int32)

    l1, l2 = cont_loss(x, centers, labels, margin)
    jax.block_until_ready((l1, l2))
    r1, r2 = cont_loss_ref(x, centers, labels, margin)
    assert jnp.allclose(l1, r1, rtol=1e-5, atol=1e-5), (l1, r1)
    assert jnp.allclose(l2, r2, rtol=1e-5, atol=1e-5), (l2, r2)

    # Case 2: multi-tile grid + padded last tile (exercises the parallel
    # B-tiling, per-tile partials and the validity mask), larger margin so
    # loss_2's hinge path is numerically exercised.
    B2, C2, D2 = 19, 10, 32
    margin2 = 10.0
    kx2, kc2, kl2, key = jax.random.split(key, 4)
    x2 = jax.random.normal(kx2, (B2, D2), dtype=jnp.float32)
    centers2 = jax.random.normal(kc2, (C2, D2), dtype=jnp.float32)
    labels2 = jax.random.randint(kl2, (B2,), 0, C2, dtype=jnp.int32)

    l1b, l2b = cont_loss(x2, centers2, labels2, margin2, block_b=8)
    jax.block_until_ready((l1b, l2b))
    r1b, r2b = cont_loss_ref(x2, centers2, labels2, margin2)
    assert jnp.allclose(l1b, r1b, rtol=1e-5, atol=1e-5), (l1b, r1b)
    assert jnp.allclose(l2b, r2b, rtol=1e-5, atol=1e-5), (l2b, r2b)

    print("KERNEL_OK")
</pallas_src>

<mosaic_0001>
module attributes {stable_mosaic.version = 11 : i64} {
  func.func @_cont_loss_kernel(%arg0: i32, %arg1: memref<8x32xf32, #tpu.memory_space<vmem>>, %arg2: memref<8x32xf32, #tpu.memory_space<vmem>>, %arg3: memref<1x8xf32, #tpu.memory_space<vmem>>, %arg4: memref<8x1xi32, #tpu.memory_space<vmem>>, %arg5: memref<1x1x1xf32, #tpu.memory_space<vmem>>, %arg6: memref<1x1x1xf32, #tpu.memory_space<vmem>>) attributes {dimension_semantics = [#tpu.dimension_semantics<parallel>], iteration_bounds = array<i64: 1>, scalar_prefetch = 0 : i64, scratch_operands = 0 : i64, tpu.core_type = #tpu.core_type<tc>, window_params = [{transform_indices = @transform_0, window_bounds = array<i64: 8, 32>}, {pipeline_mode = #tpu.pipeline_mode<synchronous>, transform_indices = @transform_1, window_bounds = array<i64: 8, 32>}, {pipeline_mode = #tpu.pipeline_mode<synchronous>, transform_indices = @transform_2, window_bounds = array<i64: 1, 8>}, {transform_indices = @transform_3, window_bounds = array<i64: 8, 1>}, {transform_indices = @transform_4, window_bounds = array<i64: 1, 1, 1>}, {transform_indices = @transform_5, window_bounds = array<i64: 1, 1, 1>}]} {
    %c0 = arith.constant 0 : index
    %c0_0 = arith.constant 0 : index
    %0 = vector.load %arg1[%c0, %c0_0] : memref<8x32xf32, #tpu.memory_space<vmem>>, vector<8x32xf32>
    %c0_1 = arith.constant 0 : index
    %c0_2 = arith.constant 0 : index
    %1 = vector.load %arg2[%c0_1, %c0_2] : memref<8x32xf32, #tpu.memory_space<vmem>>, vector<8x32xf32>
    %cst = arith.constant dense<0.000000e+00> : vector<8x8xf32>
    %2 = tpu.matmul %0, %1, %cst {dimension_numbers = #tpu.dot_dimension_numbers<[1], [1], [0], [0], [0, 0, 1, 0], [], []>} : vector<8x32xf32>, vector<8x32xf32>, vector<8x8xf32> -> vector<8x8xf32>
    %c0_3 = arith.constant 0 : index
    %c0_4 = arith.constant 0 : index
    %3 = vector.load %arg1[%c0_3, %c0_4] : memref<8x32xf32, #tpu.memory_space<vmem>>, vector<8x32xf32>
    %4 = arith.mulf %3, %3 : vector<8x32xf32>
    %cst_5 = arith.constant dense<0.000000e+00> : vector<8xf32>
    %5 = vector.multi_reduction <add>, %4, %cst_5 [1] : vector<8x32xf32> to vector<8xf32>
    %6 = vector.shape_cast %5 : vector<8xf32> to vector<8x1xf32>
    %c0_6 = arith.constant 0 : index
    %c0_7 = arith.constant 0 : index
    %7 = vector.load %arg3[%c0_6, %c0_7] : memref<1x8xf32, #tpu.memory_space<vmem>>, vector<1x8xf32>
    %8 = vector.broadcast %6 : vector<8x1xf32> to vector<8x8xf32>
    %9 = vector.broadcast %7 : vector<1x8xf32> to vector<8x8xf32>
    %10 = arith.addf %8, %9 : vector<8x8xf32>
    %cst_8 = arith.constant 2.000000e+00 : f32
    %11 = vector.broadcast %cst_8 : f32 to vector<8x8xf32>
    %12 = arith.mulf %11, %2 : vector<8x8xf32>
    %13 = arith.subf %10, %12 : vector<8x8xf32>
    %cst_9 = arith.constant 0.000000e+00 : f32
    %14 = vector.broadcast %cst_9 : f32 to vector<8x8xf32>
    %15 = arith.maximumf %13, %14 : vector<8x8xf32>
    %16 = math.sqrt %15 : vector<8x8xf32>
    %c0_10 = arith.constant 0 : index
    %c0_11 = arith.constant 0 : index
    %17 = vector.load %arg4[%c0_10, %c0_11] : memref<8x1xi32, #tpu.memory_space<vmem>>, vector<8x1xi32>
    %18 = tpu.iota {dimensions = array<i32: 1>} : vector<8x8xi32>
    %19 = vector.broadcast %17 : vector<8x1xi32> to vector<8x8xi32>
    %20 = arith.cmpi eq, %19, %18 : vector<8x8xi32>
    %c8_i32 = arith.constant 8 : i32
    %21 = arith.muli %arg0, %c8_i32 : i32
    %22 = tpu.iota {dimensions = array<i32: 0>} : vector<8x1xi32>
    %23 = vector.broadcast %21 : i32 to vector<8x1xi32>
    %24 = arith.addi %23, %22 : vector<8x1xi32>
    %c8_i32_12 = arith.constant 8 : i32
    %25 = vector.broadcast %c8_i32_12 : i32 to vector<8x1xi32>
    %26 = arith.cmpi slt, %24, %25 : vector<8x1xi32>
    %27 = arith.extui %26 : vector<8x1xi1> to vector<8x1xi32>
    %28 = arith.sitofp %27 : vector<8x1xi32> to vector<8x1xf32>
    %cst_13 = arith.constant 9.99999996E-13 : f32
    %cst_14 = arith.constant 9.99999995E+11 : f32
    %29 = vector.broadcast %cst_13 : f32 to vector<8x8xf32>
    %30 = arith.maximumf %29, %16 : vector<8x8xf32>
    %31 = vector.broadcast %cst_14 : f32 to vector<8x8xf32>
    %32 = arith.minimumf %31, %30 : vector<8x8xf32>
    %cst_15 = arith.constant 0.000000e+00 : f32
    %33 = vector.broadcast %cst_15 : f32 to vector<8x8xf32>
    %34 = arith.select %20, %32, %33 : vector<8x8xi1>, vector<8x8xf32>
    %cst_16 = arith.constant dense<0.000000e+00> : vector<8xf32>
    %35 = vector.multi_reduction <add>, %34, %cst_16 [1] : vector<8x8xf32> to vector<8xf32>
    %36 = vector.shape_cast %35 : vector<8xf32> to vector<8x1xf32>
    %cst_17 = arith.constant 3.000000e-01 : f32
    %37 = vector.broadcast %cst_17 : f32 to vector<8x8xf32>
    %38 = arith.subf %37, %16 : vector<8x8xf32>
    %cst_18 = arith.constant 0.000000e+00 : f32
    %39 = vector.broadcast %cst_18 : f32 to vector<8x8xf32>
    %40 = arith.maximumf %38, %39 : vector<8x8xf32>
    %cst_19 = arith.constant 0.000000e+00 : f32
    %41 = vector.broadcast %cst_19 : f32 to vector<8x8xf32>
    %42 = arith.select %20, %41, %40 : vector<8x8xi1>, vector<8x8xf32>
    %cst_20 = arith.constant dense<0.000000e+00> : vector<8xf32>
    %43 = vector.multi_reduction <add>, %42, %cst_20 [1] : vector<8x8xf32> to vector<8xf32>
    %44 = vector.shape_cast %43 : vector<8xf32> to vector<8x1xf32>
    %45 = arith.mulf %36, %28 : vector<8x1xf32>
    %cst_21 = arith.constant dense<0.000000e+00> : vector<1xf32>
    %46 = vector.multi_reduction <add>, %45, %cst_21 [0] : vector<8x1xf32> to vector<1xf32>
    %47 = vector.shape_cast %46 : vector<1xf32> to vector<1x1xf32>
    %48 = vector.shape_cast %47 : vector<1x1xf32> to vector<1x1x1xf32>
    %c0_22 = arith.constant 0 : index
    %c0_23 = arith.constant 0 : index
    %c0_24 = arith.constant 0 : index
    %49 = vector.load %arg5[%c0_22, %c0_23, %c0_24] : memref<1x1x1xf32, #tpu.memory_space<vmem>>, vector<1x1x1xf32>
    tpu.vector_store %arg5[%c0_22, %c0_23, %c0_24], %48 {strides = array<i32>} : memref<1x1x1xf32, #tpu.memory_space<vmem>>, vector<1x1x1xf32>,
    %50 = arith.mulf %44, %28 : vector<8x1xf32>
    %cst_25 = arith.constant dense<0.000000e+00> : vector<1xf32>
    %51 = vector.multi_reduction <add>, %50, %cst_25 [0] : vector<8x1xf32> to vector<1xf32>
    %52 = vector.shape_cast %51 : vector<1xf32> to vector<1x1xf32>
    %53 = vector.shape_cast %52 : vector<1x1xf32> to vector<1x1x1xf32>
    %c0_26 = arith.constant 0 : index
    %c0_27 = arith.constant 0 : index
    %c0_28 = arith.constant 0 : index
    %54 = vector.load %arg6[%c0_26, %c0_27, %c0_28] : memref<1x1x1xf32, #tpu.memory_space<vmem>>, vector<1x1x1xf32>
    tpu.vector_store %arg6[%c0_26, %c0_27, %c0_28], %53 {strides = array<i32>} : memref<1x1x1xf32, #tpu.memory_space<vmem>>, vector<1x1x1xf32>,
    return
  }
  func.func @transform_0(%arg0: i32) -> (i32, i32) {
    %c0_i32 = arith.constant 0 : i32
    %c0_i32_0 = arith.constant 0 : i32
    return %arg0, %c0_i32 : i32, i32
  }
  func.func @transform_1(%arg0: i32) -> (i32, i32) {
    %c0_i32 = arith.constant 0 : i32
    %c0_i32_0 = arith.constant 0 : i32
    %c0_i32_1 = arith.constant 0 : i32
    return %c0_i32, %c0_i32_0 : i32, i32
  }
  func.func @transform_2(%arg0: i32) -> (i32, i32) {
    %c0_i32 = arith.constant 0 : i32
    %c0_i32_0 = arith.constant 0 : i32
    %c0_i32_1 = arith.constant 0 : i32
    return %c0_i32, %c0_i32_0 : i32, i32
  }
  func.func @transform_3(%arg0: i32) -> (i32, i32) {
    %c0_i32 = arith.constant 0 : i32
    %c0_i32_0 = arith.constant 0 : i32
    return %arg0, %c0_i32 : i32, i32
  }
  func.func @transform_4(%arg0: i32) -> (i32, i32, i32) {
    %c0_i32 = arith.constant 0 : i32
    %c0_i32_0 = arith.constant 0 : i32
    %c0_i32_1 = arith.constant 0 : i32
    return %arg0, %c0_i32, %c0_i32_0 : i32, i32, i32
  }
  func.func @transform_5(%arg0: i32) -> (i32, i32, i32) {
    %c0_i32 = arith.constant 0 : i32
    %c0_i32_0 = arith.constant 0 : i32
    %c0_i32_1 = arith.constant 0 : i32
    return %arg0, %c0_i32, %c0_i32_0 : i32, i32, i32
  }
}

</mosaic_0001>

<bundles_post_ra>
// kernel: tpu_custom_call.1
= control target key start
LH: loop header
LB: loop body
LE: loop exit
PB: predicated region body
PF: predicated region fallthrough
CT: control target
= control target key end

     0   :  { %11 = vsyncpa [#allocation3], 0  ;;  %s382_s0 = inlined_call_operand.vmem [shape: f32[8,32], index: 0, kind: input, shape index: {}]   ;;  %s383_s1 = inlined_call_operand.hbm [shape: f32[8,32], index: 1, kind: input, shape index: {}]   ;;  %s384_s2 = inlined_call_operand.vmem [shape: f32[1,8], index: 2, kind: input, shape index: {}]   ;;  %s385_s3 = inlined_call_operand.vmem [shape: s32[8,1], index: 3, kind: input, shape index: {}]   ;;  %s386_s4 = inlined_call_operand.hbm [shape: f32[1,1,1], index: 4, kind: output, shape index: {0}]   ;;  %s387_s5 = inlined_call_operand.hbm [shape: f32[1,1,1], index: 5, kind: output, shape index: {1}]  }
   0x1   :  { %12 = vsyncpa [#allocation4], 0 }
   0x2   :  { %13 = vsyncpa [#allocation7], 0  ;;  %s299_s18 = smov [#allocation2]   ;;  %s227_s22 = scalar_lea.hbm %s383_s1, 128 }
   0x3   :  { %s22_s19 = sshll.u32 %s299_s18, 4  ;;  %p228_p0 = scmp.ne.s32.totalorder %s383_s1, %s227_s22  ;;  %s23_s19 = int_to_ptr.vmem [resolvable:$true] %s22_s19 }
   0x4   :  { %p231_p1 = scmp.lt.u32.totalorder %s227_s22, %s383_s1 }
   0x6   :  { %p233_p2 = pnand %p231_p1, %p228_p0 }
   0x8   :  { %236 = shalt.err (!%p233_p2)
}
   0x9   :  { %s237_s27 = scalar_lea.vmem %s23_s19, 128  ;;  %p242_p4 = scmp.lt.s32.totalorder %s23_s19, %s23_s19 }
   0xa   :  { %p238_p3 = scmp.ne.s32.totalorder %s23_s19, %s237_s27  ;;  %p243_p5 = scmp.lt.s32.totalorder %s237_s27, %s237_s27 }
   0xc   :  { %p244_p6 = por %p243_p5, %p242_p4 }
   0xe   :  { %p245_p7 = pnand %p244_p6, %p238_p3 }
  0x10   :  { %248 = shalt.err (!%p245_p7)
}
  0x11   :  { %25 = dma.hbm_to_vmem [thread:$0]  %s383_s1, 128, %s23_s19, [#allocation3]  }
  0x12   :  { %293 = dma.done.wait [#allocation3], 128  }
  0x13   :  { %294 = vsyncadd [#allocation3], 4294967168  ;;  %v300_v0 = vmov 0.0   ;;  %vm301_vm0 = vmmov 0   ;;  %v302_v1 = vmov 0   ;;  %vm35_vm1 = vcmask 261120  }
  0x14   :  { %213 = vmatprep.subr.mxu0 %v300_v0  ;;  %215 = vmatprep.mubr.msk.f32.mxu0 %vm301_vm0, %v300_v0  ;;  %v34_v2 = vld [vmem:[#allocation2] sm:$0xff]  ;;  %v135_v15 = vlaneseq  ;;  %vm152_vm5 = vcmask 64512   ;;  %vm169_vm6 = vcmask 0  }
  0x15   :  { %224 = vset.pattern.permute.xlu0 %v302_v1  ;;  %v33_v3 = vld [vmem:[%s382_s0] sm:$0xff]  ;;  %214 = vmatpush3.xpose.msk.msra.mxu0 %vm35_vm1, %v34_v2  ;;  %s303_s0 = smov [#allocation5]  }
  0x16   :  { %v112_v4 = vmul.f32 %v33_v3, %v33_v3  ;;  %v134_v6 = vld [vmem:[%s385_s3] sm:$0xff]  ;;  %v136_v18 = vand.u32 127, %v135_v15  ;;  %s304_s3 = smov [#allocation6]  }
  0x17   :  { %v210_v7 = vld [vmem:[%s384_s2] ss:$0 sm:$0xff]  ;;  %s185_s2 = sshll.u32 %s303_s0, 4  ;;  %s195_s10 = sshll.u32 %s304_s3, 4  ;;  %s186_s2 = int_to_ptr.vmem [resolvable:$true] %s185_s2  ;;  %s196_s10 = int_to_ptr.vmem [resolvable:$true] %s195_s10 }
  0x18   :  { %v113_v5 = vsel %vm35_vm1, %v112_v4, 0.0  ;;  %216 = vmatmul.mubr.msk.f32.vlgmr.msra.gmra.mrb[0].mxu0 %vm35_vm1, %v33_v3  ;;  %s249_s11 = scalar_lea.vmem %s186_s2, 16  ;;  %s253_s12 = scalar_lea.vmem %s186_s2, 32 }
  0x19   :  { %114 = vadd.xlane.f32.xlu0 %v113_v5  ;;  %p250_p8 = scmp.ne.s32.totalorder %s186_s2, %s249_s11  ;;  %p254_p9 = scmp.lt.s32.totalorder %s186_s2, %s186_s2 }
  0x1a   :  { %p255_p10 = scmp.lt.s32.totalorder %s253_s12, %s249_s11 }
  0x1c   :  { %p256_p11 = por %p255_p10, %p254_p9 }
  0x1e   :  { %p257_p12 = pnand %p256_p11, %p250_p8 }
  0x2f   :  { %138 = vperm.xlu0 %224, %v134_v6  }
  0xa6   :  { %v115_v8 = vpop.xlane.xlu0 %114 }
  0xa7   :  { %v123_v9 = vadd.f32 %v210_v7, %v115_v8 }
  0xae   :  { %v139_v20 = vpop.permute.xlu0 %138 }
  0xaf   :  { %vm140_vm4 = vcmp.eq.s32.totalorder %v139_v20, %v136_v18 }
  0xeb   :  { %v108_v10 = vpop.f32.mrb[0].mxu0 }
  0xec   :  { %v124_v11 = vmul.f32 2.0, %v108_v10  ;;  %v217_v12 = vpop.f32.mrb[1].mxu0 }
  0xee   :  { %v125_v13 = vsub.f32 %v123_v9, %v124_v11 }
  0xf0   :  { %v126_v14 = vmax.f32 %v125_v13, 0.0 }
  0xf2   :  { %225 = vrsqrt.f32 %v126_v14  ;;  %vm129_vm2 = vcmp.eq.f32.partialorder %v126_v14, inf  ;;  %v132_v19 = vand.u32 2147483648, %v126_v14  ;;  %vm131_vm3 = vcmp.eq.f32.partialorder %v126_v14, 0.0 }
  0xfc   :  { %v226_v16 = vpop.eup %225 }
  0xfd   :  { %v128_v17 = vmul.f32 %v226_v16, %v126_v14 }
  0xff   :  { %v130_v21 = vsel %vm129_vm2, %v126_v14, %v128_v17 }
 0x100   :  { %v133_v22 = vsel %vm131_vm3, %v132_v19, %v130_v21 }
 0x101   :  { %v149_v23 = vmax.f32 %v133_v22, 1e-12  ;;  %v156_v24 = vsub.f32 0.3, %v133_v22 }
 0x103   :  { %v150_v25 = vmin.f32 %v149_v23, 1e+12  ;;  %v157_v26 = vmax.f32 %v156_v24, 0.0 }
 0x105   :  { %v151_v27 = vsel %vm140_vm4, %v150_v25, 0.0  ;;  %v158_v29 = vsel %vm140_vm4, 0.0, %v157_v26 }
 0x106   :  { %v153_v28 = vsel %vm152_vm5, %v151_v27, 0.0  ;;  %v159_v30 = vsel %vm152_vm5, %v158_v29, 0.0 }
 0x107   :  { %154 = vadd.xlane.f32.xlu1 %v153_v28 }
 0x10b   :  { %160 = vadd.xlane.f32.xlu1 %v159_v30 }
 0x194   :  { %v155_v31 = vpop.xlane.xlu1 %154 }
 0x195   :  { %v163_v32 = vrot.slane %v155_v31, 4 }
 0x197   :  { %v164_v33 = vadd.f32 %v163_v32, %v155_v31 }
 0x198   :  { %v161_v34 = vpop.xlane.xlu1 %160 }
 0x199   :  { %v165_v35 = vrot.slane %v164_v33, 2  ;;  %v172_v36 = vrot.slane %v161_v34, 4 }
 0x19b   :  { %v166_v37 = vadd.f32 %v165_v35, %v164_v33  ;;  %v173_v38 = vadd.f32 %v172_v36, %v161_v34 }
 0x19d   :  { %v167_v39 = vrot.slane %v166_v37, 1  ;;  %v174_v40 = vrot.slane %v173_v38, 2 }
 0x19f   :  { %v168_v41 = vadd.f32 %v167_v39, %v166_v37  ;;  %v175_v42 = vadd.f32 %v174_v40, %v173_v38 }
 0x1a1   :  { %v176_v43 = vrot.slane %v175_v42, 1  ;;  %170 = vst.msk [vmem:[#allocation5] sm:$0x1] %vm169_vm6, %v168_v41 }
 0x1a2   :  { %260 = shalt.err (!%p257_p12)
}
 0x1a3   :  { %s261_s15 = scalar_lea.hbm %s386_s4, 16 }
 0x1a4   :  { %p262_p13 = scmp.ne.s32.totalorder %s386_s4, %s261_s15  ;;  %p265_p0 = scmp.lt.u32.totalorder %s261_s15, %s386_s4 }
 0x1a6   :  { %p267_p1 = pnand %p265_p0, %p262_p13 }
 0x1a8   :  { %270 = shalt.err (!%p267_p1)
}
 0x1a9   :  { %188 = dma.vmem_to_hbm [thread:$0]  %s186_s2, 16, %s386_s4, [#allocation4]   ;;  %v177_v44 = vadd.f32 %v176_v43, %v175_v42 }
 0x1aa   :  { %s271_s22 = scalar_lea.vmem %s196_s10, 16  ;;  %s275_s23 = scalar_lea.vmem %s196_s10, 32 }
 0x1ab   :  { %178 = vst.msk [vmem:[#allocation6] sm:$0x1] %vm169_vm6, %v177_v44  ;;  %p272_p2 = scmp.ne.s32.totalorder %s196_s10, %s271_s22  ;;  %p276_p3 = scmp.lt.s32.totalorder %s196_s10, %s196_s10 }
 0x1ac   :  { %p277_p4 = scmp.lt.s32.totalorder %s275_s23, %s271_s22 }
 0x1ae   :  { %p278_p5 = por %p277_p4, %p276_p3 }
 0x1b0   :  { %p279_p6 = pnand %p278_p5, %p272_p2 }
 0x1b2   :  { %282 = shalt.err (!%p279_p6)
}
 0x1b3   :  { %s283_s26 = scalar_lea.hbm %s387_s5, 16 }
 0x1b4   :  { %p284_p7 = scmp.ne.s32.totalorder %s387_s5, %s283_s26  ;;  %p287_p8 = scmp.lt.u32.totalorder %s283_s26, %s387_s5 }
 0x1b6   :  { %p289_p9 = pnand %p287_p8, %p284_p7 }
 0x1b8   :  { %292 = shalt.err (!%p289_p9)
}
 0x1b9   :  { %198 = dma.vmem_to_hbm [thread:$0]  %s196_s10, 16, %s387_s5, [#allocation7]  }
 0x1ba   :  { %295 = dma.done.wait [#allocation4], 16  }
 0x1bb   :  { %296 = vsyncadd [#allocation4], 4294967280 }
 0x1bc   :  { %297 = dma.done.wait [#allocation7], 16  }
 0x1bd   :  { %298 = vsyncadd [#allocation7], 4294967280 }
 0x1be   :  { %205 = vsyncpa [#allocation3], 1 }
 0x1bf   :  { %206 = vsyncpa [#allocation4], 1 }
 0x1c0   :  { %207 = vsyncpa [#allocation7], 1 }

</bundles_post_ra>
